<compile_context>
chip_gen: v7x
topology: tpu7x:2x2x1
jax: 0.10.0
libtpu: 0.0.40
codegen_flags: <defaults>
</compile_context>

<pallas_src>
import math

import jax
import jax.numpy as jnp
from jax.experimental import pallas as pl
from jax.experimental.pallas import tpu as pltpu


def _lm_head_kernel_acc(x_ref, w_ref, o_ref, acc_ref):
    # grid = (vocab_tiles, m_tiles, k_tiles); K (reduction) axis is last.
    k = pl.program_id(2)

    @pl.when(k == 0)
    def _():
        acc_ref[...] = jnp.zeros_like(acc_ref)

    acc_ref[...] += jnp.dot(
        x_ref[...], w_ref[...], preferred_element_type=jnp.float32
    )

    @pl.when(k == pl.num_programs(2) - 1)
    def _():
        o_ref[...] = acc_ref[...].astype(o_ref.dtype)


def _lm_head_kernel_noacc(x_ref, w_ref, o_ref):
    # Single K step: no accumulator round-trip, one cast + lane-dense store.
    o_ref[...] = jnp.dot(
        x_ref[...], w_ref[...], preferred_element_type=jnp.float32
    ).astype(o_ref.dtype)


def _default_tiles(M, D, V, w_itemsize):
    """Pick (tm, tn, tk) that divide (M, V, D) and fit every TPU generation."""
    # Vocab tile: largest multiple of 128 (<= 2048) dividing V -> unmasked,
    # lane-dense stores and plenty of parallel tiles for megacore.
    tn = V
    for cand in (2048, 1024, 512, 384, 256, 128):
        if V % cand == 0:
            tn = cand
            break
    # K tile: full K unless the (tk, tn) weight tile would be too large to
    # double-buffer comfortably (cap ~8 MiB -> <= ~16 MiB of weight buffers,
    # safe even on v7x's 64 MiB VMEM); halve while keeping a 128 multiple.
    tk = D
    while tk * tn * w_itemsize > (8 << 20) and tk % 256 == 0:
        tk //= 2
    # M tile: untiled in decode (weight read exactly once); 256 for prefill.
    tm = M
    if M > 512:
        for cand in (256, 128, 64, 32, 16, 8):
            if M % cand == 0:
                tm = cand
                break
    return tm, tn, tk


def lm_head(x, weight, *, tm=None, tn=None, tk=None, out_dtype=jnp.bfloat16):
    """x: (M, D); weight: (D, V) == output.weight.permute(1, 0). Returns (M, V)."""
    M, D = x.shape
    Dw, V = weight.shape
    assert D == Dw, (D, Dw)

    dt_m, dt_n, dt_k = _default_tiles(M, D, V, jnp.dtype(weight.dtype).itemsize)
    tm = dt_m if tm is None else tm
    tn = dt_n if tn is None else tn
    tk = dt_k if tk is None else tk
    assert M % tm == 0 and V % tn == 0 and D % tk == 0, (tm, tn, tk)

    nv, nm, nk = V // tn, M // tm, D // tk
    grid = (nv, nm, nk)  # vocab outermost, M next, K (reduction) innermost

    in_specs = [
        # activations: M tile i, K chunk k
        pl.BlockSpec((tm, tk), lambda j, i, k: (i, k)),
        # weight: K chunk k, vocab tile j
        pl.BlockSpec((tk, tn), lambda j, i, k: (k, j)),
    ]
    # output tile (i, j): this realizes the per-split concat on dim=-1
    out_specs = pl.BlockSpec((tm, tn), lambda j, i, k: (i, j))

    if nk == 1:
        kernel = _lm_head_kernel_noacc
        scratch_shapes = []
    else:
        kernel = _lm_head_kernel_acc
        scratch_shapes = [pltpu.VMEM((tm, tn), jnp.float32)]

    isz = lambda dt: jnp.dtype(dt).itemsize
    vmem_bytes = 2 * (  # double-buffered pipeline buffers
        tm * tk * isz(x.dtype)
        + tk * tn * isz(weight.dtype)
        + tm * tn * isz(out_dtype)
    )
    if nk > 1:
        vmem_bytes += tm * tn * 4  # f32 accumulator scratch
    # Headroom; clamp to 64 MiB so the same request is valid on v7x.
    vmem_limit = min(max(int(vmem_bytes * 1.5) + (4 << 20), 32 << 20), 64 << 20)

    return pl.pallas_call(
        kernel,
        out_shape=jax.ShapeDtypeStruct((M, V), out_dtype),
        grid_spec=pltpu.PrefetchScalarGridSpec(
            num_scalar_prefetch=0,
            grid=grid,
            in_specs=in_specs,
            out_specs=out_specs,
            scratch_shapes=scratch_shapes,
        ),
        compiler_params=pltpu.CompilerParams(
            dimension_semantics=("parallel", "parallel", "arbitrary"),
            vmem_limit_bytes=vmem_limit,
        ),
    )(x, weight)


if __name__ == "__main__":
    key = jax.random.PRNGKey(0)
    k1, k2, k3, k4 = jax.random.split(key, 4)

    def ref_lm_head(x, w):
        return (x.astype(jnp.float32) @ w.astype(jnp.float32)).astype(jnp.bfloat16)

    # Test 1: decode-like toy shapes, single K step (no-accumulator path).
    M, D, V = 8, 64, 512
    x1 = jax.random.normal(k1, (M, D), dtype=jnp.float32).astype(jnp.bfloat16)
    # Synthetic "output.weight" of shape (vocab, dim), then permute(1, 0).
    w1 = (
        (jax.random.normal(k2, (V, D), dtype=jnp.float32) / math.sqrt(D))
        .astype(jnp.bfloat16)
        .T
    )  # (D, V)
    out1 = jax.block_until_ready(lm_head(x1, w1))
    ref1 = ref_lm_head(x1, w1)
    assert out1.shape == (M, V) and out1.dtype == jnp.bfloat16
    err1 = jnp.max(jnp.abs(out1.astype(jnp.float32) - ref1.astype(jnp.float32)))
    assert float(err1) < 1e-1, f"test1 max abs err {err1}"

    # Test 2: exercises the full 3-D grid (4 vocab tiles, 2 M tiles, 2 K tiles)
    # and the f32 accumulator path.
    M2, D2, V2 = 16, 256, 512
    x2 = jax.random.normal(k3, (M2, D2), dtype=jnp.float32).astype(jnp.bfloat16)
    w2 = (
        (jax.random.normal(k4, (V2, D2), dtype=jnp.float32) / math.sqrt(D2))
        .astype(jnp.bfloat16)
        .T
    )  # (D2, V2)
    out2 = jax.block_until_ready(lm_head(x2, w2, tm=8, tn=128, tk=128))
    ref2 = ref_lm_head(x2, w2)
    assert out2.shape == (M2, V2) and out2.dtype == jnp.bfloat16
    err2 = jnp.max(jnp.abs(out2.astype(jnp.float32) - ref2.astype(jnp.float32)))
    assert float(err2) < 1e-1, f"test2 max abs err {err2}"

    print("KERNEL_OK")
</pallas_src>

<mosaic_0001>
module attributes {stable_mosaic.version = 11 : i64} {
  func.func @_lm_head_kernel_noacc(%arg0: i32, %arg1: i32, %arg2: i32, %arg3: memref<8x64xbf16, #tpu.memory_space<vmem>>, %arg4: memref<64x512xbf16, #tpu.memory_space<vmem>>, %arg5: memref<8x512xbf16, #tpu.memory_space<vmem>>) attributes {dimension_semantics = [#tpu.dimension_semantics<parallel>, #tpu.dimension_semantics<parallel>, #tpu.dimension_semantics<arbitrary>], iteration_bounds = array<i64: 1, 1, 1>, scalar_prefetch = 0 : i64, scratch_operands = 0 : i64, tpu.core_type = #tpu.core_type<tc>, window_params = [{transform_indices = @transform_0, window_bounds = array<i64: 8, 64>}, {transform_indices = @transform_1, window_bounds = array<i64: 64, 512>}, {transform_indices = @transform_2, window_bounds = array<i64: 8, 512>}]} {
    %c0 = arith.constant 0 : index
    %c0_0 = arith.constant 0 : index
    %0 = vector.load %arg3[%c0, %c0_0] : memref<8x64xbf16, #tpu.memory_space<vmem>>, vector<8x64xbf16>
    %c0_1 = arith.constant 0 : index
    %c0_2 = arith.constant 0 : index
    %1 = vector.load %arg4[%c0_1, %c0_2] : memref<64x512xbf16, #tpu.memory_space<vmem>>, vector<64x512xbf16>
    %cst = arith.constant dense<0.000000e+00> : vector<8x512xf32>
    %2 = tpu.matmul %0, %1, %cst {dimension_numbers = #tpu.dot_dimension_numbers<[1], [0], [0], [1], [0, 0, 1, 1], [], []>} : vector<8x64xbf16>, vector<64x512xbf16>, vector<8x512xf32> -> vector<8x512xf32>
    %3 = arith.truncf %2 : vector<8x512xf32> to vector<8x512xbf16>
    %c0_3 = arith.constant 0 : index
    %c0_4 = arith.constant 0 : index
    %4 = vector.load %arg5[%c0_3, %c0_4] : memref<8x512xbf16, #tpu.memory_space<vmem>>, vector<8x512xbf16>
    tpu.vector_store %arg5[%c0_3, %c0_4], %3 {strides = array<i32>} : memref<8x512xbf16, #tpu.memory_space<vmem>>, vector<8x512xbf16>,
    return
  }
  func.func @transform_0(%arg0: i32, %arg1: i32, %arg2: i32) -> (i32, i32) {
    %c0_i32 = arith.constant 0 : i32
    return %arg1, %arg2 : i32, i32
  }
  func.func @transform_1(%arg0: i32, %arg1: i32, %arg2: i32) -> (i32, i32) {
    %c0_i32 = arith.constant 0 : i32
    return %arg2, %arg0 : i32, i32
  }
  func.func @transform_2(%arg0: i32, %arg1: i32, %arg2: i32) -> (i32, i32) {
    %c0_i32 = arith.constant 0 : i32
    return %arg1, %arg0 : i32, i32
  }
}

</mosaic_0001>

<bundles_post_ra>
// kernel: tpu_custom_call.1
= control target key start
LH: loop header
LB: loop body
LE: loop exit
PB: predicated region body
PF: predicated region fallthrough
CT: control target
= control target key end

     0   :  { %7 = vsyncpa [#allocation3], 0  ;;  %s444_s0 = inlined_call_operand.hbm [shape: bf16[8,64], index: 0, kind: input, shape index: {}]   ;;  %s445_s1 = inlined_call_operand.hbm [shape: bf16[64,512], index: 1, kind: input, shape index: {}]   ;;  %s446_s2 = inlined_call_operand.hbm [shape: bf16[8,512], index: 2, kind: output, shape index: {}]  }
   0x1   :  { %8 = vsyncpa [#allocation6], 0 }
   0x2   :  { %9 = vsyncpa [#allocation4], 0  ;;  %s380_s9 = smov [#allocation2]   ;;  %s381_s11 = smov [#allocation5]  }
   0x3   :  { %s16_s10 = sshll.u32 %s380_s9, 4  ;;  %s25_s12 = sshll.u32 %s381_s11, 4  ;;  %s17_s10 = int_to_ptr.vmem [resolvable:$true] %s16_s10  ;;  %s401_s12 = int_to_ptr.vmem [resolvable:$true] %s25_s12 }
   0x4   :  { %s308_s15 = scalar_lea.hbm %s444_s0, 64 }
   0x5   :  { %p309_p0 = scmp.ne.s32.totalorder %s444_s0, %s308_s15  ;;  %p312_p1 = scmp.lt.u32.totalorder %s308_s15, %s444_s0 }
   0x7   :  { %p314_p2 = pnand %p312_p1, %p309_p0 }
   0x9   :  { %317 = shalt.err (!%p314_p2)
}
   0xa   :  { %s318_s20 = scalar_lea.vmem %s17_s10, 64  ;;  %p323_p4 = scmp.lt.s32.totalorder %s17_s10, %s17_s10 }
   0xb   :  { %p319_p3 = scmp.ne.s32.totalorder %s17_s10, %s318_s20  ;;  %p324_p5 = scmp.lt.s32.totalorder %s318_s20, %s318_s20 }
   0xd   :  { %p325_p6 = por %p324_p5, %p323_p4 }
   0xf   :  { %p326_p7 = pnand %p325_p6, %p319_p3 }
  0x11   :  { %329 = shalt.err (!%p326_p7)
}
  0x12   :  { %19 = dma.hbm_to_vmem [thread:$0]  %s444_s0, 64, %s17_s10, [#allocation3]  }
  0x13   :  { %s330_s25 = scalar_lea.hbm %s445_s1, 2048 }
  0x14   :  { %p331_p8 = scmp.ne.s32.totalorder %s445_s1, %s330_s25  ;;  %p334_p9 = scmp.lt.u32.totalorder %s330_s25, %s445_s1 }
  0x16   :  { %p336_p10 = pnand %p334_p9, %p331_p8 }
  0x18   :  { %339 = shalt.err (!%p336_p10)
}
  0x19   :  { %s340_s30 = scalar_lea.vmem %s401_s12, 2048  ;;  %p345_p12 = scmp.lt.s32.totalorder %s401_s12, %s401_s12 }
  0x1a   :  { %p341_p11 = scmp.ne.s32.totalorder %s401_s12, %s340_s30  ;;  %p346_p13 = scmp.lt.s32.totalorder %s340_s30, %s340_s30 }
  0x1c   :  { %p347_p0 = por %p346_p13, %p345_p12 }
  0x1e   :  { %p348_p1 = pnand %p347_p0, %p341_p11 }
  0x20   :  { %351 = shalt.err (!%p348_p1)
}
  0x21   :  { %s382_s0 = smov 256   ;;  %s383_s3 = smov 16  }
  0x22   :  { %31 = dma.hbm_to_vmem [thread:$0]  %s445_s1, 2048, %s401_s12, [#allocation6], %s382_s0, %s382_s0, %s383_s3  }
  0x23   :  { %374 = dma.done.wait [#allocation3], 64  }
  0x24   :  { %375 = vsyncadd [#allocation3], 4294967232 }
  0x25   :  { %376 = dma.done.wait [#allocation6], 2048  }
  0x26   :  { %377 = vsyncadd [#allocation6], 4294965248  ;;  %v384_v0 = vmov 0   ;;  %v284_v1 = vld [vmem:[#allocation5 + $0x4] ss:$16 sps:$4 sm:$0xff]   ;;  %vm136_vm0 = vcmask 523264  }
  0x27   :  { %172 = vmatprep.mubr.bf16.mxu0 %v384_v0  ;;  %213 = vmatprep.mubr.bf16.mxu1 %v384_v0  ;;  %v286_v2 = vld [vmem:[#allocation5 + $0xc] ss:$16 sps:$4 sm:$0xff]   ;;  %v288_v3 = vld [vmem:[#allocation5] ss:$16 sps:$4 sm:$0xff]   ;;  %v289_v4 = vld [vmem:[#allocation5 + $0x8] ss:$16 sps:$4 sm:$0xff]  }
  0x28   :  { %140 = vmatprep.subr.bf16.mxu0 %v284_v1  ;;  %181 = vmatprep.subr.bf16.mxu1 %v286_v2  ;;  %v290_v5 = vld [vmem:[#allocation5 + $0x24] ss:$16 sps:$4 sm:$0xff]   ;;  %v292_v6 = vld [vmem:[#allocation5 + $0x2c] ss:$16 sps:$4 sm:$0xff]   ;;  %v294_v7 = vld [vmem:[#allocation5 + $0x20] ss:$16 sps:$4 sm:$0xff]  }
  0x29   :  { %141 = vmatpush1.bf16.msra.mxu0 %v288_v3  ;;  %182 = vmatpush1.bf16.msra.mxu1 %v289_v4  ;;  %v295_v8 = vld [vmem:[#allocation5 + $0x28] ss:$16 sps:$4 sm:$0xff]   ;;  %v296_v9 = vld [vmem:[#allocation5 + $0x44] ss:$16 sps:$4 sm:$0xff]   ;;  %v298_v10 = vld [vmem:[#allocation5 + $0x4c] ss:$16 sps:$4 sm:$0xff]  }
  0x2a   :  { %142 = vmatprep.subr.bf16.mxu0 %v290_v5  ;;  %183 = vmatprep.subr.bf16.mxu1 %v292_v6  ;;  %v300_v11 = vld [vmem:[#allocation5 + $0x40] ss:$16 sps:$4 sm:$0xff]   ;;  %v301_v12 = vld [vmem:[#allocation5 + $0x48] ss:$16 sps:$4 sm:$0xff]   ;;  %v302_v13 = vld [vmem:[#allocation5 + $0x64] ss:$16 sps:$4 sm:$0xff]  }
  0x2b   :  { %v304_v14 = vld [vmem:[#allocation5 + $0x6c] ss:$16 sps:$4 sm:$0xff]   ;;  %v306_v15 = vld [vmem:[#allocation5 + $0x60] ss:$16 sps:$4 sm:$0xff]   ;;  %v307_v16 = vld [vmem:[#allocation5 + $0x68] ss:$16 sps:$4 sm:$0xff]  }
  0x2c   :  { %v39_v17 = vld [vmem:[#allocation2] sm:$0xf]  ;;  %s385_s1 = smov [#allocation7]  }
  0x2d   :  { %143 = vmatpush1.bf16.msra.mxu0 %v294_v7  ;;  %184 = vmatpush1.bf16.msra.mxu1 %v295_v8  ;;  %s246_s6 = sshll.u32 %s385_s1, 4  ;;  %s247_s6 = int_to_ptr.vmem [resolvable:$true] %s246_s6 }
  0x2e   :  { %144 = vmatprep.subr.bf16.mxu0 %v296_v9  ;;  %185 = vmatprep.subr.bf16.mxu1 %v298_v10  ;;  %s352_s7 = scalar_lea.vmem %s247_s6, 256  ;;  %p357_p3 = scmp.lt.s32.totalorder %s247_s6, %s247_s6 }
  0x2f   :  { %p353_p2 = scmp.ne.s32.totalorder %s247_s6, %s352_s7  ;;  %p358_p4 = scmp.lt.s32.totalorder %s352_s7, %s352_s7 }
  0x31   :  { %145 = vmatpush1.bf16.msra.mxu0 %v300_v11  ;;  %186 = vmatpush1.bf16.msra.mxu1 %v301_v12  ;;  %p359_p5 = por %p358_p4, %p357_p3 }
  0x32   :  { %146 = vmatprep.subr.bf16.mxu0 %v302_v13  ;;  %187 = vmatprep.subr.bf16.mxu1 %v304_v14 }
  0x33   :  { %p360_p6 = pnand %p359_p5, %p353_p2 }
  0x35   :  { %147 = vmatpush1.bf16.msra.mxu0 %v306_v15  ;;  %188 = vmatpush1.bf16.msra.mxu1 %v307_v16 }
  0x38   :  { %272 = vmatmul.mubr.msk.bf16.vlgmr.msra.gmra.mrb[0].mxu0 %vm136_vm0, %v39_v17  ;;  %273 = vmatmul.mubr.msk.bf16.vlgmr.msra.gmra.mrb[0].mxu1 %vm136_vm0, %v39_v17 }
 0x10b   :  { %v174_v18 = vpop.f32.mrb[0].mxu0  ;;  %v215_v19 = vpop.f32.mrb[0].mxu1 }
 0x10c   :  { %v176_v20 = vpop.f32.mrb[1].mxu0  ;;  %v217_v21 = vpop.f32.mrb[1].mxu1 }
 0x10d   :  { %v276_v22 = vpack.c.bf16 %v176_v20, %v174_v18  ;;  %v277_v23 = vpack.c.bf16 %v217_v21, %v215_v19  ;;  %v178_v24 = vpop.f32.mrb[2].mxu0  ;;  %v219_v25 = vpop.f32.mrb[2].mxu1 }
 0x10e   :  { %v179_v26 = vpop.f32.mrb[3].mxu0  ;;  %v220_v27 = vpop.f32.mrb[3].mxu1 }
 0x10f   :  { %238 = vst [vmem:[#allocation7] sm:$0xff] %v276_v22  ;;  %239 = vst [vmem:[#allocation7 + $0x8] sm:$0xff] %v277_v23 }
 0x110   :  { %363 = shalt.err (!%p360_p6)
}
 0x111   :  { %s364_s10 = scalar_lea.hbm %s446_s2, 256 }
 0x112   :  { %p365_p7 = scmp.ne.s32.totalorder %s446_s2, %s364_s10  ;;  %p368_p8 = scmp.lt.u32.totalorder %s364_s10, %s446_s2 }
 0x114   :  { %p370_p9 = pnand %p368_p8, %p365_p7 }
 0x116   :  { %373 = shalt.err (!%p370_p9)
}
 0x117   :  { %249 = dma.vmem_to_hbm [thread:$0]  %s247_s6, 256, %s446_s2, [#allocation4]  }
 0x118   :  { %378 = dma.done.wait [#allocation4], 256  }
 0x119   :  { %379 = vsyncadd [#allocation4], 4294967040 }
 0x11a   :  { %253 = vsyncpa [#allocation3], 1 }
 0x11b   :  { %254 = vsyncpa [#allocation6], 1 }
 0x11c   :  { %255 = vsyncpa [#allocation4], 1 }

</bundles_post_ra>
